<compile_context>
chip_gen: v7x
topology: tpu7x:2x2x1
jax: 0.10.0
libtpu: 0.0.40
codegen_flags: <defaults>
</compile_context>

<pallas_src>
import math

import jax
import jax.numpy as jnp
from jax.experimental import pallas as pl
from jax.experimental.pallas import tpu as pltpu


def _bias_add_kernel(x_ref, b_ref, o_ref):
    # b_ref is (1, TW) or (TR, 1); it broadcasts against the (TR, TW) x block.
    o_ref[...] = x_ref[...] + b_ref[...]


def _round_down(x, m):
    return max(m, (x // m) * m)


def _round_up(x, m):
    return ((x + m - 1) // m) * m


def _block_byte_budget():
    """Per-block byte budget keyed on TPU generation (scoped-VMEM defaults)."""
    try:
        kind = jax.devices()[0].device_kind.lower()
    except Exception:
        kind = ""
    if "v6" in kind or "v7" in kind:
        # 32 MiB scoped default -> ~16 MiB double-buffered x + out at 4 MiB blocks.
        return 4 << 20
    # v5e (16 MiB scoped default) and anything unknown: stay at ~2 MiB blocks.
    return 2 << 20


def _pick_tiles(R, W, itemsize, budget):
    """Pick (TR, TW): (sub,128)-aligned or full-extent blocks near `budget` bytes."""
    # Sublane multiple: 8 for 32-bit, 16 for bf16, 32 for int8/fp8 (packing).
    sub = max(8, 32 // max(1, itemsize))

    # Lane (last) dim: full extent if it fits the budget at the minimal sublane
    # count, otherwise the largest 128-multiple that does (lane-dense stores).
    max_lane = _round_down(budget // (sub * itemsize), 128)
    TW = W if W <= max_lane else max_lane

    # Sublane dim: grow TR until the block hits ~budget bytes.
    row_cap = max(1, budget // (TW * itemsize))
    TR = R if R <= row_cap else _round_down(row_cap, sub)

    # v7x has two TensorCores per chip: make sure the parallel grid has at
    # least 2 blocks on non-tiny inputs so both cores get work.  The extra
    # ~0.35 us grid step is noise on single-core v5e/v6e.
    if R > 2 * sub and pl.cdiv(R, TR) * pl.cdiv(W, TW) < 2:
        TR = _round_up(pl.cdiv(R, 2), sub)

    return TR, TW


def _tiled_bias_add(x2d, b2d, *, donate_x=False):
    """x2d: (R, W); b2d: (1, W) row bias or (R, 1) column bias."""
    R, W = x2d.shape
    itemsize = jnp.dtype(x2d.dtype).itemsize
    TR, TW = _pick_tiles(R, W, itemsize, _block_byte_budget())
    grid = (pl.cdiv(R, TR), pl.cdiv(W, TW))

    if b2d.shape[0] == 1:          # row bias (1, W)
        b_block, b_map = (1, TW), (lambda i, j: (0, j))
    else:                          # column bias (R, 1)
        b_block, b_map = (TR, 1), (lambda i, j: (i, 0))

    cost = pl.CostEstimate(
        flops=R * W,
        transcendentals=0,
        bytes_accessed=2 * R * W * itemsize + b2d.size * itemsize,
    )

    return pl.pallas_call(
        _bias_add_kernel,
        out_shape=jax.ShapeDtypeStruct((R, W), x2d.dtype),
        grid=grid,
        in_specs=[
            pl.BlockSpec((TR, TW), lambda i, j: (i, j)),
            pl.BlockSpec(b_block, b_map),
        ],
        out_specs=pl.BlockSpec((TR, TW), lambda i, j: (i, j)),
        compiler_params=pltpu.CompilerParams(
            dimension_semantics=("parallel", "parallel")
        ),
        cost_estimate=cost,
        input_output_aliases=({0: 0} if donate_x else {}),
    )(x2d, b2d)


def _row_bias_add(x2d, bias_row, *, donate_x=False):
    """x2d: (N, F) + bias_row (F,), regrouped to a lane-dense layout when needed."""
    N, F = x2d.shape
    if F % 128 != 0:
        g = 128 // math.gcd(F, 128)
        # Regroup g rows into one lane-dense row of g*F elements (a multiple of
        # 128) so stores are unmasked full-lane vst; pad N up to a multiple of
        # g when needed (pad/slice cost is negligible once N >= g).
        if g > 1 and N >= g:
            Np = _round_up(N, g)
            xp = x2d if Np == N else jnp.pad(x2d, ((0, Np - N), (0, 0)))
            xg = xp.reshape(Np // g, g * F)
            bg = jnp.tile(bias_row.reshape(1, F), (1, g))       # (1, g*F)
            out = _tiled_bias_add(xg, bg, donate_x=donate_x).reshape(Np, F)
            return out[:N] if Np != N else out
    # Tiny-N / already-dense fallback: full-extent row bias.
    return _tiled_bias_add(x2d, bias_row.reshape(1, F), donate_x=donate_x)


def add_bias(x, bias, *, donate_x=False):
    """Pallas equivalent of AddBias.forward; `bias` has shape (C, 1)."""
    C = bias.shape[0]
    # Match PyTorch type promotion (e.g. bf16 x + f32 bias -> f32 result).
    out_dtype = jnp.result_type(x.dtype, bias.dtype)
    x = x.astype(out_dtype)
    bias_vec = bias.reshape(C).astype(out_dtype)

    if x.ndim == 2:
        N, Cx = x.shape
        assert Cx == C, "channel mismatch between x and bias"
        return _row_bias_add(x, bias_vec, donate_x=donate_x)

    if x.ndim == 4:
        N, Cx, H, W = x.shape
        assert Cx == C, "channel mismatch between x and bias"
        HW = H * W
        if HW % 128 == 0:
            # Already lane-dense: pack N*C rows into sublanes, tiny column bias.
            x_flat = x.reshape(N * C, HW)
            b_col = jnp.tile(bias_vec.reshape(C, 1), (N, 1))    # (N*C, 1)
            out = _tiled_bias_add(x_flat, b_col, donate_x=donate_x)
            return out.reshape(N, C, H, W)
        # Small / ragged feature maps (e.g. 7x7): flatten channels into the
        # lane axis and reuse the lane-dense 2-D path with a repeated row bias.
        x_flat = x.reshape(N, C * HW)
        b_row = jnp.repeat(bias_vec, HW)                        # (C*HW,), tiny
        out = _row_bias_add(x_flat, b_row, donate_x=donate_x)
        return out.reshape(N, C, H, W)

    raise ValueError(f"AddBias expects 2-D or 4-D input, got {x.ndim}-D")


if __name__ == "__main__":
    key = jax.random.PRNGKey(0)
    k1, k2, k3, k4, k5 = jax.random.split(key, 5)

    C = 4
    # Deterministic "parameter": equivalent of nn.Parameter(bias.unsqueeze(1)).
    bias_vec = jax.random.normal(k1, (C,), dtype=jnp.float32)
    bias_param = bias_vec[:, None]                              # (C, 1)

    # 4-D NCHW, HW a multiple of 128 -> (N*C, HW) column-bias path.
    x4 = jax.random.normal(k2, (2, C, 16, 16), dtype=jnp.float32)
    out4 = jax.block_until_ready(add_bias(x4, bias_param))
    assert out4.shape == x4.shape and out4.dtype == x4.dtype
    assert jnp.allclose(out4, x4 + bias_vec.reshape(1, C, 1, 1), atol=1e-6), "4D mismatch"

    # 4-D NCHW, small HW (7x7) -> (N, C*HW) row-bias lane-dense path.
    x4b = jax.random.normal(k3, (2, C, 7, 7), dtype=jnp.float32)
    out4b = jax.block_until_ready(add_bias(x4b, bias_param))
    assert out4b.shape == x4b.shape and out4b.dtype == x4b.dtype
    assert jnp.allclose(out4b, x4b + bias_vec.reshape(1, C, 1, 1), atol=1e-6), "4D small-HW mismatch"

    # 2-D, tiny N -> full-extent fallback path.
    x2 = jax.random.normal(k4, (8, C), dtype=jnp.float32)
    out2 = jax.block_until_ready(add_bias(x2, bias_param))
    assert out2.shape == x2.shape and out2.dtype == x2.dtype
    assert jnp.allclose(out2, x2 + bias_vec.reshape(1, C), atol=1e-6), "2D mismatch"

    # 2-D, N >= g (and not a multiple of g) -> padded + regrouped lane-dense path.
    x2b = jax.random.normal(k5, (70, C), dtype=jnp.float32)
    out2b = jax.block_until_ready(add_bias(x2b, bias_param))
    assert out2b.shape == x2b.shape and out2b.dtype == x2b.dtype
    assert jnp.allclose(out2b, x2b + bias_vec.reshape(1, C), atol=1e-6), "2D (padded/regrouped) mismatch"

    print("KERNEL_OK")
</pallas_src>

<mosaic_0001>
module attributes {stable_mosaic.version = 11 : i64} {
  func.func @_bias_add_kernel(%arg0: i32, %arg1: i32, %arg2: memref<8x256xf32, #tpu.memory_space<vmem>>, %arg3: memref<8x1xf32, #tpu.memory_space<vmem>>, %arg4: memref<8x256xf32, #tpu.memory_space<vmem>>) attributes {dimension_semantics = [#tpu.dimension_semantics<parallel>, #tpu.dimension_semantics<parallel>], iteration_bounds = array<i64: 1, 1>, scalar_prefetch = 0 : i64, scratch_operands = 0 : i64, tpu.core_type = #tpu.core_type<tc>, window_params = [{transform_indices = @transform_0, window_bounds = array<i64: 8, 256>}, {transform_indices = @transform_1, window_bounds = array<i64: 8, 1>}, {transform_indices = @transform_2, window_bounds = array<i64: 8, 256>}]} {
    %c0 = arith.constant 0 : index
    %c0_0 = arith.constant 0 : index
    %0 = vector.load %arg2[%c0, %c0_0] : memref<8x256xf32, #tpu.memory_space<vmem>>, vector<8x256xf32>
    %c0_1 = arith.constant 0 : index
    %c0_2 = arith.constant 0 : index
    %1 = vector.load %arg3[%c0_1, %c0_2] : memref<8x1xf32, #tpu.memory_space<vmem>>, vector<8x1xf32>
    %2 = vector.broadcast %1 : vector<8x1xf32> to vector<8x256xf32>
    %3 = arith.addf %0, %2 : vector<8x256xf32>
    %c0_3 = arith.constant 0 : index
    %c0_4 = arith.constant 0 : index
    %4 = vector.load %arg4[%c0_3, %c0_4] : memref<8x256xf32, #tpu.memory_space<vmem>>, vector<8x256xf32>
    tpu.vector_store %arg4[%c0_3, %c0_4], %3 {strides = array<i32>} : memref<8x256xf32, #tpu.memory_space<vmem>>, vector<8x256xf32>,
    return
  }
  func.func @transform_0(%arg0: i32, %arg1: i32) -> (i32, i32) {
    %c0_i32 = arith.constant 0 : i32
    return %arg0, %arg1 : i32, i32
  }
  func.func @transform_1(%arg0: i32, %arg1: i32) -> (i32, i32) {
    %c0_i32 = arith.constant 0 : i32
    %c0_i32_0 = arith.constant 0 : i32
    return %arg0, %c0_i32 : i32, i32
  }
  func.func @transform_2(%arg0: i32, %arg1: i32) -> (i32, i32) {
    %c0_i32 = arith.constant 0 : i32
    return %arg0, %arg1 : i32, i32
  }
}

</mosaic_0001>

<bundles_post_ra>
// kernel: tpu_custom_call.1
= control target key start
LH: loop header
LB: loop body
LE: loop exit
PB: predicated region body
PF: predicated region fallthrough
CT: control target
= control target key end

     0   :  { %7 = vsyncpa [#allocation3], 0  ;;  %s148_s0 = inlined_call_operand.hbm [shape: f32[8,256], index: 0, kind: input, shape index: {}]   ;;  %s149_s1 = inlined_call_operand.vmem [shape: f32[8,1], index: 1, kind: input, shape index: {}]   ;;  %s150_s2 = inlined_call_operand.hbm [shape: f32[8,256], index: 2, kind: output, shape index: {}]  }
   0x1   :  { %8 = vsyncpa [#allocation4], 0  ;;  %s103_s9 = smov [#allocation2]   ;;  %s55_s13 = scalar_lea.hbm %s148_s0, 256 }
   0x2   :  { %s15_s10 = sshll.u32 %s103_s9, 4  ;;  %p56_p0 = scmp.ne.s32.totalorder %s148_s0, %s55_s13  ;;  %s16_s10 = int_to_ptr.vmem [resolvable:$true] %s15_s10 }
   0x3   :  { %p59_p1 = scmp.lt.u32.totalorder %s55_s13, %s148_s0 }
   0x5   :  { %p61_p2 = pnand %p59_p1, %p56_p0 }
   0x7   :  { %64 = shalt.err (!%p61_p2)
}
   0x8   :  { %s65_s18 = scalar_lea.vmem %s16_s10, 256  ;;  %p70_p4 = scmp.lt.s32.totalorder %s16_s10, %s16_s10 }
   0x9   :  { %p66_p3 = scmp.ne.s32.totalorder %s16_s10, %s65_s18  ;;  %p71_p5 = scmp.lt.s32.totalorder %s65_s18, %s65_s18 }
   0xb   :  { %p72_p6 = por %p71_p5, %p70_p4 }
   0xd   :  { %p73_p7 = pnand %p72_p6, %p66_p3 }
   0xf   :  { %76 = shalt.err (!%p73_p7)
}
  0x10   :  { %18 = dma.hbm_to_vmem [thread:$0]  %s148_s0, 256, %s16_s10, [#allocation3]  }
  0x11   :  { %99 = dma.done.wait [#allocation3], 256  }
  0x12   :  { %100 = vsyncadd [#allocation3], 4294967040  ;;  %v104_v0 = vmov 0   ;;  %v26_v1 = vld [vmem:[%s149_s1] sm:$0xff]  ;;  %v25_v3 = vld [vmem:[#allocation2 + $0x8] sm:$0xff]  ;;  %s105_s23 = smov [#allocation5]  }
  0x13   :  { %54 = vset.pattern.permute.xlu0 %v104_v0  ;;  %v24_v2 = vld [vmem:[#allocation2] sm:$0xff]  ;;  %s42_s24 = sshll.u32 %s105_s23, 4  ;;  %s43_s24 = int_to_ptr.vmem [resolvable:$true] %s42_s24 }
  0x14   :  { %29 = vperm.xlu0 %54, %v26_v1   ;;  %s77_s0 = scalar_lea.vmem %s43_s24, 256  ;;  %p82_p9 = scmp.lt.s32.totalorder %s43_s24, %s43_s24 }
  0x15   :  { %p78_p8 = scmp.ne.s32.totalorder %s43_s24, %s77_s0  ;;  %p83_p10 = scmp.lt.s32.totalorder %s77_s0, %s77_s0 }
  0x17   :  { %p84_p11 = por %p83_p10, %p82_p9 }
  0x19   :  { %p85_p12 = pnand %p84_p11, %p78_p8 }
  0x93   :  { %v30_v4 = vpop.permute.xlu0 %29 }
  0x94   :  { %v32_v5 = vadd.f32 %v30_v4, %v24_v2  ;;  %v33_v6 = vadd.f32 %v30_v4, %v25_v3 }
  0x96   :  { %34 = vst [vmem:[#allocation5] sm:$0xff] %v32_v5  ;;  %35 = vst [vmem:[#allocation5 + $0x8] sm:$0xff] %v33_v6 }
  0x97   :  { %88 = shalt.err (!%p85_p12)
}
  0x98   :  { %s89_s26 = scalar_lea.hbm %s150_s2, 256 }
  0x99   :  { %p90_p13 = scmp.ne.s32.totalorder %s150_s2, %s89_s26  ;;  %p93_p0 = scmp.lt.u32.totalorder %s89_s26, %s150_s2 }
  0x9b   :  { %p95_p1 = pnand %p93_p0, %p90_p13 }
  0x9d   :  { %98 = shalt.err (!%p95_p1)
}
  0x9e   :  { %45 = dma.vmem_to_hbm [thread:$0]  %s43_s24, 256, %s150_s2, [#allocation4]  }
  0x9f   :  { %101 = dma.done.wait [#allocation4], 256  }
  0xa0   :  { %102 = vsyncadd [#allocation4], 4294967040 }
  0xa1   :  { %49 = vsyncpa [#allocation3], 1 }
  0xa2   :  { %50 = vsyncpa [#allocation4], 1 }

</bundles_post_ra>
